<compile_context>
chip_gen: v7x
topology: tpu7x:2x2x1
jax: 0.10.0
libtpu: 0.0.40
codegen_flags: <defaults>
</compile_context>

<pallas_src>
import functools

import jax
import jax.numpy as jnp
import numpy as np
from jax import lax
from jax.experimental import pallas as pl
from jax.experimental.pallas import tpu as pltpu


# ----------------------------------------------------------------------------- kernel
def _rollout_kernel(dim_nl, total_t, tc,
                    # streamed / resident inputs
                    inp_ref, li0_ref, lo0_ref, x0_ref,
                    w_pre_ref, w_post_ref, d11_ref,
                    # outputs
                    y_ref, x_final_ref,
                    # VMEM-resident controller memory
                    slab):
    """One grid step = one time-chunk of `tc` controller steps for one batch shard."""
    f32 = jnp.float32
    di = x0_ref.shape[0]
    din = li0_ref.shape[0]
    dout = lo0_ref.shape[0]
    # slab row layout: [ x | inp | last_in | last_out | w ]  (feature dims are multiples of 8,
    # so every sub-slice below is sublane-tile aligned)
    X0, X1 = 0, di
    IN0, IN1 = X1, X1 + din
    LI0, LI1 = IN1, IN1 + din
    LO0, LO1 = LI1, LI1 + dout
    PRE = LO1
    W0, W1 = PRE, PRE + dim_nl

    c = pl.program_id(1)                                   # chunk index (time is sequential)

    @pl.when(c == 0)
    def _init():
        slab[X0:X1, :] = x0_ref[...]
        slab[LI0:LI1, :] = li0_ref[...]
        slab[LO0:LO1, :] = lo0_ref[...]
        # IN / W rows are (re)written every step before they are read.

    # chunk-invariant weights: loaded once per chunk, live across the whole time loop
    w_pre = w_pre_ref[...]            # (dim_nl, PRE)
    w_post = w_post_ref[...]          # (di + dout, PRE + dim_nl)
    d11r = d11_ref[...]               # (dim_nl, dim_nl, B): cols of D11/Lambda, lane-replicated

    if total_t % tc == 0:
        n_steps = tc                                        # static trip count
    else:
        n_steps = jnp.minimum(tc, total_t - c * tc)         # ragged tail chunk

    def step(s, carry):
        inp = inp_ref[s]                                    # (din, B)
        slab[IN0:IN1, :] = inp
        # fused matmul #1:  v = W_pre @ [x; inp; last_in; last_out]
        # (plant subtraction and 1/Lambda are folded into W_pre on the host)
        v = jnp.dot(w_pre, slab[0:PRE, :], preferred_element_type=f32)
        # strictly-lower-triangular implicit tanh solve: column i depends only on w[<i], so
        # rank-1 VPU updates suffice (rows <= i receive exactly +0).  D11/Lambda columns are
        # lane-pre-replicated, so the serial chain has no per-iteration lane broadcast.
        for i in range(dim_nl - 1):                         # static, unrolled (dim_nl is small)
            ti = jnp.tanh(v[i:i + 1, :])
            v = v + d11r[i] * ti
        w = jnp.tanh(v)                                     # every row of v is final here
        slab[W0:W1, :] = w
        # fused matmul #2:  [x+; y] = W_post @ [x; inp; last_in; last_out; w]
        # (E^{-1}, the C2 substitution of x+ and output_amplification folded on the host)
        xy = jnp.dot(w_post, slab[...], preferred_element_type=f32)
        x_new = xy[0:di, :]
        y = xy[di:, :]
        y_ref[s] = y
        # carry controller memory to the next step (never leaves VMEM)
        slab[X0:X1, :] = x_new
        slab[LI0:LI1, :] = inp
        slab[LO0:LO1, :] = y
        return carry

    lax.fori_loop(0, n_steps, step, 0)

    @pl.when(c == pl.num_programs(1) - 1)
    def _finalize():                                        # write the final REN state once
        x_final_ref[...] = slab[X0:X1, :]


@functools.partial(jax.jit, static_argnames=("dim_nl", "time_chunk", "batch_splits"))
def perfboost_rollout(inputs_tbd, last_in0, last_out0, x0, w_pre, w_post, d11l,
                      *, dim_nl, time_chunk=16, batch_splits=1):
    """inputs_tbd: (T, B, dim_in).  Returns (y (T, B, dim_out), x_final (B, dim_internal)).

    The whole T-step rollout (time loop + controller memory) runs in ONE pallas_call;
    each grid step processes `time_chunk` controller steps in-kernel.
    """
    T, B, dim_in = inputs_tbd.shape
    dim_out = last_out0.shape[-1]
    dim_internal = x0.shape[-1]

    assert B % batch_splits == 0
    b_sub = B // batch_splits
    # Splitting the batch across TensorCores (v7x) only pays off when each shard stays
    # lane-dense; on 1-TC chips (v5e/v6e) keep batch_splits=1 (a >1 split just serializes).
    assert batch_splits == 1 or b_sub % 128 == 0

    tc = max(1, min(time_chunk, T))
    n_chunks = (T + tc - 1) // tc
    t_pad = n_chunks * tc

    # Internal layout: batch on lanes, features on sublanes.  Single in-jit XLA pass each way;
    # at these shapes the rollout is latency-bound, not HBM-bound.
    inputs = jnp.transpose(inputs_tbd, (0, 2, 1))           # (T, dim_in, B)
    if t_pad != T:
        inputs = jnp.pad(inputs, ((0, t_pad - T), (0, 0), (0, 0)))
    li0, lo0, x0t = last_in0.T, last_out0.T, x0.T

    # Columns of D11/Lambda pre-replicated across the lane (batch) axis.
    d11_rep = jnp.broadcast_to(jnp.transpose(d11l)[:, :, None], (dim_nl, dim_nl, b_sub))

    slab_rows = dim_internal + 2 * dim_in + dim_out + dim_nl

    kernel = functools.partial(_rollout_kernel, dim_nl, T, tc)
    grid_spec = pltpu.PrefetchScalarGridSpec(
        num_scalar_prefetch=0,
        grid=(batch_splits, n_chunks),
        in_specs=[
            pl.BlockSpec((tc, dim_in, b_sub), lambda p, c: (c, 0, p)),      # streamed inputs
            pl.BlockSpec((dim_in, b_sub), lambda p, c: (0, p)),             # initial last_input
            pl.BlockSpec((dim_out, b_sub), lambda p, c: (0, p)),            # initial last_output
            pl.BlockSpec((dim_internal, b_sub), lambda p, c: (0, p)),       # initial REN state
            pl.BlockSpec(w_pre.shape, lambda p, c: (0, 0)),                 # weights: VMEM-resident
            pl.BlockSpec(w_post.shape, lambda p, c: (0, 0)),
            pl.BlockSpec((dim_nl, dim_nl, b_sub), lambda p, c: (0, 0, 0)),
        ],
        out_specs=(
            pl.BlockSpec((tc, dim_out, b_sub), lambda p, c: (c, 0, p)),     # y, one chunk/block
            pl.BlockSpec((dim_internal, b_sub), lambda p, c: (0, p)),       # final REN state
        ),
        scratch_shapes=[
            pltpu.VMEM((slab_rows, b_sub), jnp.float32),    # [x | inp | last_in | last_out | w]
        ],
    )
    y_tdb, x_final_db = pl.pallas_call(
        kernel,
        out_shape=(jax.ShapeDtypeStruct((t_pad, dim_out, B), jnp.float32),
                   jax.ShapeDtypeStruct((dim_internal, B), jnp.float32)),
        grid_spec=grid_spec,
        compiler_params=pltpu.CompilerParams(
            dimension_semantics=("parallel", "arbitrary")),  # batch shards ||, time sequential
    )(inputs, li0, lo0, x0t, w_pre, w_post, d11_rep)

    return jnp.transpose(y_tdb[:T], (0, 2, 1)), x_final_db.T


# ----------------------------------------------------------------------------- host-side glue
def init_params(key, dim_in, dim_out, dim_internal, dim_nl,
                initialization_std=0.5, posdef_tol=1e-3):
    """Deterministic synthetic parameters (constructed REN matrices + stable LTI plant)."""
    ks = jax.random.split(key, 13)
    std = initialization_std
    A_sys = 0.02 * jax.random.normal(ks[0], (dim_in, dim_in))
    B_sys = 0.002 * jax.random.normal(ks[1], (dim_in, dim_out))
    F = (std / np.sqrt(dim_internal)) * jax.random.normal(ks[2], (dim_internal, dim_internal))
    B1 = std * jax.random.normal(ks[3], (dim_internal, dim_nl))
    B2 = std * jax.random.normal(ks[4], (dim_internal, dim_in))
    C1 = std * jax.random.normal(ks[5], (dim_nl, dim_internal))
    D11 = jnp.tril(std * jax.random.normal(ks[6], (dim_nl, dim_nl)), k=-1)   # strictly lower-tri
    D12 = std * jax.random.normal(ks[7], (dim_nl, dim_in))
    C2 = std * jax.random.normal(ks[8], (dim_out, dim_internal))
    D21 = std * jax.random.normal(ks[9], (dim_out, dim_nl))
    D22 = std * jax.random.normal(ks[10], (dim_out, dim_in))
    Lambda = 1.0 + 0.1 * jnp.abs(jax.random.normal(ks[11], (dim_nl,)))       # positive diag
    R = jax.random.normal(ks[12], (dim_internal, dim_internal))
    E = (1.0 + posdef_tol) * jnp.eye(dim_internal) + (R @ R.T) / dim_internal  # SPD
    # TODO(synk): the free-parameter -> (E, F, Lambda, ...) construction of REN._update_model_param()
    #             is done as plain-JAX host glue, not inside the kernel.
    E_inv = jnp.linalg.inv(E)
    f32 = lambda m: jnp.asarray(m, jnp.float32)
    return {k: f32(v) for k, v in dict(
        A=A_sys, Bsys=B_sys, F=F, B1=B1, B2=B2, C1=C1, D11=D11, D12=D12,
        C2=C2, D21=D21, D22=D22, Lambda=Lambda, Einv=E_inv).items()}


def fold_params(p, output_amplification):
    """Fold plant, E^{-1}, 1/Lambda, the C2 substitution of x+ and output_amplification into
    two stacked matrices (host, once).  Per controller step the kernel then does exactly two
    matmuls plus the tanh solve:

        z       = [x; inp; last_in; last_out]         (u = inp - A last_in - Bsys last_out)
        v       = W_pre  @ z              -> strictly-lower tanh solve -> w
        [x+; y] = W_post @ [z; w]
    """
    # TODO(synk): arbitrary / time-varying `noiseless_forward` callables cannot be folded;
    #             the kernel assumes the synthetic LTI plant u_noiseless = A last_in + Bsys last_out.
    hp = jax.lax.Precision.HIGHEST
    mm = lambda a, b: jnp.dot(a, b, precision=hp)
    lam = p["Lambda"].reshape(-1, 1)                                  # (dim_nl, 1)
    C1l, D12l, D11l = p["C1"] / lam, p["D12"] / lam, p["D11"] / lam   # rows pre-divided by Lambda
    EF, EB1, EB2 = mm(p["Einv"], p["F"]), mm(p["Einv"], p["B1"]), mm(p["Einv"], p["B2"])
    A, Bs = p["A"], p["Bsys"]
    C2, D21, D22 = p["C2"], p["D21"], p["D22"]
    amp = jnp.float32(output_amplification)
    dim_internal, dim_out = p["F"].shape[0], C2.shape[0]

    # v  = [C1/L | D12/L | -(D12/L)A | -(D12/L)Bsys] @ [x; inp; li; lo]
    w_pre = jnp.concatenate([C1l, D12l, -mm(D12l, A), -mm(D12l, Bs)], axis=1)
    # x+ = [EinvF | EinvB2 | -(EinvB2)A | -(EinvB2)Bsys | EinvB1] @ [x; inp; li; lo; w]
    w_x = jnp.concatenate([EF, EB2, -mm(EB2, A), -mm(EB2, Bs), EB1], axis=1)
    # y  = amp*(C2 x+ + D21 w + D22 u)  with both x+ and u substituted in
    w_u = jnp.concatenate([jnp.zeros((dim_out, dim_internal), jnp.float32),
                           D22, -mm(D22, A), -mm(D22, Bs), D21], axis=1)
    w_y = amp * (mm(C2, w_x) + w_u)
    w_post = jnp.concatenate([w_x, w_y], axis=0)

    f32 = lambda m: jnp.asarray(m, jnp.float32)
    return {"W_pre": f32(w_pre), "W_post": f32(w_post), "D11l": f32(D11l)}


class PerfBoostControllerPallas:
    """Stateful wrapper mirroring PerfBoostController (per-step __call__ and batched rollout)."""

    def __init__(self, params, input_init, output_init, dim_internal, dim_nl,
                 output_amplification=20.0, time_chunk=16, batch_splits=1):
        self.kp = fold_params(params, output_amplification)
        self.input_init = jnp.asarray(input_init, jnp.float32).reshape(1, -1)
        self.output_init = jnp.asarray(output_init, jnp.float32).reshape(1, -1)
        self.dim_in = self.input_init.shape[-1]
        self.dim_out = self.output_init.shape[-1]
        self.dim_internal = dim_internal
        self.dim_nl = dim_nl
        self.output_amplification = float(output_amplification)
        self.time_chunk = int(time_chunk)
        self.batch_splits = int(batch_splits)   # set to 2 on v7x when batch shards are lane-dense
        self.reset()

    def reset(self):
        self.t = 0
        self.last_input = self.input_init
        self.last_output = self.output_init
        self.x = jnp.zeros((1, self.dim_internal), jnp.float32)     # REN init state = 0

    def rollout(self, inputs):
        """inputs: (T, batch, 1, dim_in) or (T, batch, dim_in). Runs T steps in ONE pallas_call."""
        inputs = jnp.asarray(inputs, jnp.float32)
        T, B = inputs.shape[0], inputs.shape[1]
        inputs = inputs.reshape(T, B, self.dim_in)

        last_in0 = jnp.broadcast_to(self.last_input, (B, self.dim_in))
        last_out0 = jnp.broadcast_to(self.last_output, (B, self.dim_out))
        x0 = jnp.broadcast_to(self.x, (B, self.dim_internal))

        kp = self.kp
        y, x_final = perfboost_rollout(inputs, last_in0, last_out0, x0,
                                       kp["W_pre"], kp["W_post"], kp["D11l"],
                                       dim_nl=self.dim_nl, time_chunk=self.time_chunk,
                                       batch_splits=self.batch_splits)

        # controller memory update (matches the torch module's mutable state;
        # last_output is stored post-amplification, exactly as in the torch forward)
        self.last_input = inputs[-1]
        self.last_output = y[-1]
        self.x = x_final
        self.t += T
        return y.reshape(T, B, 1, self.dim_out)

    def __call__(self, input_t):
        """input_t: (batch, 1, dim_in) -> (batch, 1, dim_out); single controller step."""
        return self.rollout(jnp.asarray(input_t, jnp.float32)[None])[0]


# ----------------------------------------------------------------------------- reference & test
def _reference_rollout(p, amp, dim_nl, inputs, last_in, last_out, x):
    """Pure-JAX reference (row-vector form, original un-folded parameters)."""
    hp = jax.lax.Precision.HIGHEST
    mm = lambda a, b: jnp.dot(a, b, precision=hp)
    lam = p["Lambda"]
    ys = []
    for t in range(inputs.shape[0]):
        inp = inputs[t]
        u = inp - (mm(last_in, p["A"].T) + mm(last_out, p["Bsys"].T))
        w = jnp.zeros((inp.shape[0], dim_nl), jnp.float32)
        for i in range(dim_nl):
            v = mm(x, p["C1"].T) + mm(w, p["D11"].T) + mm(u, p["D12"].T)
            w = w.at[:, i].set(jnp.tanh(v[:, i] / lam[i]))
        x = mm(mm(x, p["F"].T) + mm(w, p["B1"].T) + mm(u, p["B2"].T), p["Einv"].T)
        y = (mm(x, p["C2"].T) + mm(w, p["D21"].T) + mm(u, p["D22"].T)) * amp
        ys.append(y)
        last_in, last_out = inp, y
    return jnp.stack(ys), x, last_in, last_out


if __name__ == "__main__":
    batch, dim_in, dim_out, dim_internal, dim_nl = 16, 8, 8, 16, 8
    T = 20                                   # not a multiple of time_chunk -> ragged tail chunk
    amp = 20.0

    key = jax.random.PRNGKey(0)
    k_par, k_in0, k_out0, k_seq, k_extra = jax.random.split(key, 5)

    params = init_params(k_par, dim_in, dim_out, dim_internal, dim_nl,
                         initialization_std=0.2, posdef_tol=1e-3)
    input_init = 0.1 * jax.random.normal(k_in0, (1, dim_in))
    output_init = 0.1 * jax.random.normal(k_out0, (1, dim_out))

    ctrl = PerfBoostControllerPallas(params, input_init, output_init,
                                     dim_internal, dim_nl, amp,
                                     time_chunk=8, batch_splits=1)

    inputs = jax.random.normal(k_seq, (T, batch, 1, dim_in), jnp.float32)

    # T controller steps in a single pallas_call (chunked time loop + state carry run on-chip)
    y_seq = jax.block_until_ready(ctrl.rollout(inputs))              # (T, batch, 1, dim_out)

    # pure-JAX stateful reference
    ref_in = jnp.broadcast_to(ctrl.input_init, (batch, dim_in))
    ref_out = jnp.broadcast_to(ctrl.output_init, (batch, dim_out))
    ref_x = jnp.zeros((batch, dim_internal), jnp.float32)
    y_ref, ref_x, ref_in, ref_out = _reference_rollout(
        params, amp, dim_nl, inputs.reshape(T, batch, dim_in), ref_in, ref_out, ref_x)

    ok = bool(np.allclose(np.asarray(y_seq.reshape(T, batch, dim_out)),
                          np.asarray(y_ref), rtol=1e-3, atol=2e-3))
    ok &= bool(np.allclose(np.asarray(ctrl.x), np.asarray(ref_x), rtol=1e-3, atol=2e-3))

    # one more step through the per-step API (same kernel, T=1), continuing the state
    extra = jax.random.normal(k_extra, (batch, 1, dim_in), jnp.float32)
    y_one = jax.block_until_ready(ctrl(extra))                       # (batch, 1, dim_out)
    y_ref1, ref_x, _, _ = _reference_rollout(
        params, amp, dim_nl, extra.reshape(1, batch, dim_in), ref_in, ref_out, ref_x)

    ok &= bool(np.allclose(np.asarray(y_one.reshape(batch, dim_out)),
                           np.asarray(y_ref1[0]), rtol=1e-3, atol=2e-3))
    ok &= bool(np.allclose(np.asarray(ctrl.x), np.asarray(ref_x), rtol=1e-3, atol=2e-3))

    if ok:
        print("KERNEL_OK")
    else:
        raise SystemExit("mismatch between Pallas kernel and JAX reference")
</pallas_src>

<mosaic_0001>
module attributes {stable_mosaic.version = 11 : i64} {
  func.func @_rollout_kernel(%arg0: i32, %arg1: i32, %arg2: memref<8x8x16xf32, #tpu.memory_space<vmem>>, %arg3: memref<8x16xf32, #tpu.memory_space<vmem>>, %arg4: memref<8x16xf32, #tpu.memory_space<vmem>>, %arg5: memref<16x16xf32, #tpu.memory_space<vmem>>, %arg6: memref<8x40xf32, #tpu.memory_space<vmem>>, %arg7: memref<24x48xf32, #tpu.memory_space<vmem>>, %arg8: memref<8x8x16xf32, #tpu.memory_space<vmem>>, %arg9: memref<8x8x16xf32, #tpu.memory_space<vmem>>, %arg10: memref<16x16xf32, #tpu.memory_space<vmem>>, %arg11: memref<48x16xf32, #tpu.memory_space<vmem>>) attributes {dimension_semantics = [#tpu.dimension_semantics<parallel>, #tpu.dimension_semantics<arbitrary>], iteration_bounds = array<i64: 1, 3>, scalar_prefetch = 0 : i64, scratch_operands = 1 : i64, tpu.core_type = #tpu.core_type<tc>, window_params = [{transform_indices = @transform_0, window_bounds = array<i64: 8, 8, 16>}, {transform_indices = @transform_1, window_bounds = array<i64: 8, 16>}, {transform_indices = @transform_2, window_bounds = array<i64: 8, 16>}, {transform_indices = @transform_3, window_bounds = array<i64: 16, 16>}, {pipeline_mode = #tpu.pipeline_mode<synchronous>, transform_indices = @transform_4, window_bounds = array<i64: 8, 40>}, {pipeline_mode = #tpu.pipeline_mode<synchronous>, transform_indices = @transform_5, window_bounds = array<i64: 24, 48>}, {pipeline_mode = #tpu.pipeline_mode<synchronous>, transform_indices = @transform_6, window_bounds = array<i64: 8, 8, 16>}, {transform_indices = @transform_7, window_bounds = array<i64: 8, 8, 16>}, {transform_indices = @transform_8, window_bounds = array<i64: 16, 16>}]} {
    %c0_i32 = arith.constant 0 : i32
    %0 = arith.cmpi eq, %arg1, %c0_i32 : i32
    %1 = arith.extui %0 : i1 to i32
    %c0_i32_0 = arith.constant 0 : i32
    %2 = arith.cmpi ne, %1, %c0_i32_0 : i32
    scf.if %2 {
      %c0_11 = arith.constant 0 : index
      %c0_12 = arith.constant 0 : index
      %14 = vector.load %arg5[%c0_11, %c0_12] : memref<16x16xf32, #tpu.memory_space<vmem>>, vector<16x16xf32>
      %c0_13 = arith.constant 0 : index
      %c0_14 = arith.constant 0 : index
      %15 = vector.load %arg11[%c0_13, %c0_14] : memref<48x16xf32, #tpu.memory_space<vmem>>, vector<16x16xf32>
      tpu.vector_store %arg11[%c0_13, %c0_14], %14 {strides = array<i32>} : memref<48x16xf32, #tpu.memory_space<vmem>>, vector<16x16xf32>,
      %c0_15 = arith.constant 0 : index
      %c0_16 = arith.constant 0 : index
      %16 = vector.load %arg3[%c0_15, %c0_16] : memref<8x16xf32, #tpu.memory_space<vmem>>, vector<8x16xf32>
      %c24 = arith.constant 24 : index
      %c0_17 = arith.constant 0 : index
      %17 = vector.load %arg11[%c24, %c0_17] : memref<48x16xf32, #tpu.memory_space<vmem>>, vector<8x16xf32>
      tpu.vector_store %arg11[%c24, %c0_17], %16 {strides = array<i32>} : memref<48x16xf32, #tpu.memory_space<vmem>>, vector<8x16xf32>,
      %c0_18 = arith.constant 0 : index
      %c0_19 = arith.constant 0 : index
      %18 = vector.load %arg4[%c0_18, %c0_19] : memref<8x16xf32, #tpu.memory_space<vmem>>, vector<8x16xf32>
      %c32 = arith.constant 32 : index
      %c0_20 = arith.constant 0 : index
      %19 = vector.load %arg11[%c32, %c0_20] : memref<48x16xf32, #tpu.memory_space<vmem>>, vector<8x16xf32>
      tpu.vector_store %arg11[%c32, %c0_20], %18 {strides = array<i32>} : memref<48x16xf32, #tpu.memory_space<vmem>>, vector<8x16xf32>,
    } else {
    }
    %c0 = arith.constant 0 : index
    %c0_1 = arith.constant 0 : index
    %3 = vector.load %arg6[%c0, %c0_1] : memref<8x40xf32, #tpu.memory_space<vmem>>, vector<8x40xf32>
    %c0_2 = arith.constant 0 : index
    %c0_3 = arith.constant 0 : index
    %4 = vector.load %arg7[%c0_2, %c0_3] : memref<24x48xf32, #tpu.memory_space<vmem>>, vector<24x48xf32>
    %c0_4 = arith.constant 0 : index
    %c0_5 = arith.constant 0 : index
    %c0_6 = arith.constant 0 : index
    %5 = vector.load %arg8[%c0_4, %c0_5, %c0_6] : memref<8x8x16xf32, #tpu.memory_space<vmem>>, vector<8x8x16xf32>
    %c8_i32 = arith.constant 8 : i32
    %6 = arith.muli %arg1, %c8_i32 : i32
    %c20_i32 = arith.constant 20 : i32
    %7 = arith.subi %c20_i32, %6 : i32
    %c8_i32_7 = arith.constant 8 : i32
    %8 = arith.minsi %c8_i32_7, %7 : i32
    %c0_i32_8 = arith.constant 0 : i32
    %c0_i32_9 = arith.constant 0 : i32
    %9 = arith.subi %8, %c0_i32_9 : i32
    %10 = arith.addi %c0_i32_9, %9 : i32
    %c1_i32 = arith.constant 1 : i32
    scf.for %arg12 = %c0_i32_9 to %10 step %c1_i32  : i32 {
      %14 = arith.index_cast %arg12 : i32 to index
      %c0_11 = arith.constant 0 : index
      %c0_12 = arith.constant 0 : index
      %15 = vector.load %arg2[%14, %c0_11, %c0_12] : memref<8x8x16xf32, #tpu.memory_space<vmem>>, vector<1x8x16xf32>
      %16 = vector.shape_cast %15 : vector<1x8x16xf32> to vector<8x16xf32>
      %c16 = arith.constant 16 : index
      %c0_13 = arith.constant 0 : index
      %17 = vector.load %arg11[%c16, %c0_13] : memref<48x16xf32, #tpu.memory_space<vmem>>, vector<8x16xf32>
      tpu.vector_store %arg11[%c16, %c0_13], %16 {strides = array<i32>} : memref<48x16xf32, #tpu.memory_space<vmem>>, vector<8x16xf32>,
      %c0_14 = arith.constant 0 : index
      %c0_15 = arith.constant 0 : index
      %18 = vector.load %arg11[%c0_14, %c0_15] : memref<48x16xf32, #tpu.memory_space<vmem>>, vector<40x16xf32>
      %cst = arith.constant dense<0.000000e+00> : vector<8x16xf32>
      %19 = tpu.matmul %3, %18, %cst {dimension_numbers = #tpu.dot_dimension_numbers<[1], [0], [0], [1], [0, 0, 1, 1], [], []>} : vector<8x40xf32>, vector<40x16xf32>, vector<8x16xf32> -> vector<8x16xf32>
      %20 = vector.extract_strided_slice %19 {offsets = [0, 0], sizes = [1, 16], strides = [1, 1]} : vector<8x16xf32> to vector<1x16xf32>
      %21 = math.tanh %20 : vector<1x16xf32>
      %22 = vector.extract_strided_slice %5 {offsets = [0, 0, 0], sizes = [1, 8, 16], strides = [1, 1, 1]} : vector<8x8x16xf32> to vector<1x8x16xf32>
      %23 = vector.shape_cast %22 : vector<1x8x16xf32> to vector<8x16xf32>
      %24 = vector.broadcast %21 : vector<1x16xf32> to vector<8x16xf32>
      %25 = arith.mulf %23, %24 : vector<8x16xf32>
      %26 = arith.addf %19, %25 : vector<8x16xf32>
      %27 = vector.extract_strided_slice %26 {offsets = [1, 0], sizes = [1, 16], strides = [1, 1]} : vector<8x16xf32> to vector<1x16xf32>
      %28 = math.tanh %27 : vector<1x16xf32>
      %29 = vector.extract_strided_slice %5 {offsets = [1, 0, 0], sizes = [1, 8, 16], strides = [1, 1, 1]} : vector<8x8x16xf32> to vector<1x8x16xf32>
      %30 = vector.shape_cast %29 : vector<1x8x16xf32> to vector<8x16xf32>
      %31 = vector.broadcast %28 : vector<1x16xf32> to vector<8x16xf32>
      %32 = arith.mulf %30, %31 : vector<8x16xf32>
      %33 = arith.addf %26, %32 : vector<8x16xf32>
      %34 = vector.extract_strided_slice %33 {offsets = [2, 0], sizes = [1, 16], strides = [1, 1]} : vector<8x16xf32> to vector<1x16xf32>
      %35 = math.tanh %34 : vector<1x16xf32>
      %36 = vector.extract_strided_slice %5 {offsets = [2, 0, 0], sizes = [1, 8, 16], strides = [1, 1, 1]} : vector<8x8x16xf32> to vector<1x8x16xf32>
      %37 = vector.shape_cast %36 : vector<1x8x16xf32> to vector<8x16xf32>
      %38 = vector.broadcast %35 : vector<1x16xf32> to vector<8x16xf32>
      %39 = arith.mulf %37, %38 : vector<8x16xf32>
      %40 = arith.addf %33, %39 : vector<8x16xf32>
      %41 = vector.extract_strided_slice %40 {offsets = [3, 0], sizes = [1, 16], strides = [1, 1]} : vector<8x16xf32> to vector<1x16xf32>
      %42 = math.tanh %41 : vector<1x16xf32>
      %43 = vector.extract_strided_slice %5 {offsets = [3, 0, 0], sizes = [1, 8, 16], strides = [1, 1, 1]} : vector<8x8x16xf32> to vector<1x8x16xf32>
      %44 = vector.shape_cast %43 : vector<1x8x16xf32> to vector<8x16xf32>
      %45 = vector.broadcast %42 : vector<1x16xf32> to vector<8x16xf32>
      %46 = arith.mulf %44, %45 : vector<8x16xf32>
      %47 = arith.addf %40, %46 : vector<8x16xf32>
      %48 = vector.extract_strided_slice %47 {offsets = [4, 0], sizes = [1, 16], strides = [1, 1]} : vector<8x16xf32> to vector<1x16xf32>
      %49 = math.tanh %48 : vector<1x16xf32>
      %50 = vector.extract_strided_slice %5 {offsets = [4, 0, 0], sizes = [1, 8, 16], strides = [1, 1, 1]} : vector<8x8x16xf32> to vector<1x8x16xf32>
      %51 = vector.shape_cast %50 : vector<1x8x16xf32> to vector<8x16xf32>
      %52 = vector.broadcast %49 : vector<1x16xf32> to vector<8x16xf32>
      %53 = arith.mulf %51, %52 : vector<8x16xf32>
      %54 = arith.addf %47, %53 : vector<8x16xf32>
      %55 = vector.extract_strided_slice %54 {offsets = [5, 0], sizes = [1, 16], strides = [1, 1]} : vector<8x16xf32> to vector<1x16xf32>
      %56 = math.tanh %55 : vector<1x16xf32>
      %57 = vector.extract_strided_slice %5 {offsets = [5, 0, 0], sizes = [1, 8, 16], strides = [1, 1, 1]} : vector<8x8x16xf32> to vector<1x8x16xf32>
      %58 = vector.shape_cast %57 : vector<1x8x16xf32> to vector<8x16xf32>
      %59 = vector.broadcast %56 : vector<1x16xf32> to vector<8x16xf32>
      %60 = arith.mulf %58, %59 : vector<8x16xf32>
      %61 = arith.addf %54, %60 : vector<8x16xf32>
      %62 = vector.extract_strided_slice %61 {offsets = [6, 0], sizes = [1, 16], strides = [1, 1]} : vector<8x16xf32> to vector<1x16xf32>
      %63 = math.tanh %62 : vector<1x16xf32>
      %64 = vector.extract_strided_slice %5 {offsets = [6, 0, 0], sizes = [1, 8, 16], strides = [1, 1, 1]} : vector<8x8x16xf32> to vector<1x8x16xf32>
      %65 = vector.shape_cast %64 : vector<1x8x16xf32> to vector<8x16xf32>
      %66 = vector.broadcast %63 : vector<1x16xf32> to vector<8x16xf32>
      %67 = arith.mulf %65, %66 : vector<8x16xf32>
      %68 = arith.addf %61, %67 : vector<8x16xf32>
      %69 = math.tanh %68 : vector<8x16xf32>
      %c40 = arith.constant 40 : index
      %c0_16 = arith.constant 0 : index
      %70 = vector.load %arg11[%c40, %c0_16] : memref<48x16xf32, #tpu.memory_space<vmem>>, vector<8x16xf32>
      tpu.vector_store %arg11[%c40, %c0_16], %69 {strides = array<i32>} : memref<48x16xf32, #tpu.memory_space<vmem>>, vector<8x16xf32>,
      %c0_17 = arith.constant 0 : index
      %c0_18 = arith.constant 0 : index
      %71 = vector.load %arg11[%c0_17, %c0_18] : memref<48x16xf32, #tpu.memory_space<vmem>>, vector<48x16xf32>
      %cst_19 = arith.constant dense<0.000000e+00> : vector<24x16xf32>
      %72 = tpu.matmul %4, %71, %cst_19 {dimension_numbers = #tpu.dot_dimension_numbers<[1], [0], [0], [1], [0, 0, 1, 1], [], []>} : vector<24x48xf32>, vector<48x16xf32>, vector<24x16xf32> -> vector<24x16xf32>
      %73 = vector.extract_strided_slice %72 {offsets = [0, 0], sizes = [16, 16], strides = [1, 1]} : vector<24x16xf32> to vector<16x16xf32>
      %74 = vector.extract_strided_slice %72 {offsets = [16, 0], sizes = [8, 16], strides = [1, 1]} : vector<24x16xf32> to vector<8x16xf32>
      %75 = arith.index_cast %arg12 : i32 to index
      %c0_20 = arith.constant 0 : index
      %c0_21 = arith.constant 0 : index
      %76 = vector.load %arg9[%75, %c0_20, %c0_21] : memref<8x8x16xf32, #tpu.memory_space<vmem>>, vector<1x8x16xf32>
      %77 = vector.shape_cast %76 : vector<1x8x16xf32> to vector<8x16xf32>
      %78 = vector.shape_cast %74 : vector<8x16xf32> to vector<1x8x16xf32>
      tpu.vector_store %arg9[%75, %c0_20, %c0_21], %78 {strides = array<i32>} : memref<8x8x16xf32, #tpu.memory_space<vmem>>, vector<1x8x16xf32>,
      %c0_22 = arith.constant 0 : index
      %c0_23 = arith.constant 0 : index
      %79 = vector.load %arg11[%c0_22, %c0_23] : memref<48x16xf32, #tpu.memory_space<vmem>>, vector<16x16xf32>
      tpu.vector_store %arg11[%c0_22, %c0_23], %73 {strides = array<i32>} : memref<48x16xf32, #tpu.memory_space<vmem>>, vector<16x16xf32>,
      %c24 = arith.constant 24 : index
      %c0_24 = arith.constant 0 : index
      %80 = vector.load %arg11[%c24, %c0_24] : memref<48x16xf32, #tpu.memory_space<vmem>>, vector<8x16xf32>
      tpu.vector_store %arg11[%c24, %c0_24], %16 {strides = array<i32>} : memref<48x16xf32, #tpu.memory_space<vmem>>, vector<8x16xf32>,
      %c32 = arith.constant 32 : index
      %c0_25 = arith.constant 0 : index
      %81 = vector.load %arg11[%c32, %c0_25] : memref<48x16xf32, #tpu.memory_space<vmem>>, vector<8x16xf32>
      tpu.vector_store %arg11[%c32, %c0_25], %74 {strides = array<i32>} : memref<48x16xf32, #tpu.memory_space<vmem>>, vector<8x16xf32>,
    }
    %c2_i32 = arith.constant 2 : i32
    %11 = arith.cmpi eq, %arg1, %c2_i32 : i32
    %12 = arith.extui %11 : i1 to i32
    %c0_i32_10 = arith.constant 0 : i32
    %13 = arith.cmpi ne, %12, %c0_i32_10 : i32
    scf.if %13 {
      %c0_11 = arith.constant 0 : index
      %c0_12 = arith.constant 0 : index
      %14 = vector.load %arg11[%c0_11, %c0_12] : memref<48x16xf32, #tpu.memory_space<vmem>>, vector<16x16xf32>
      %c0_13 = arith.constant 0 : index
      %c0_14 = arith.constant 0 : index
      %15 = vector.load %arg10[%c0_13, %c0_14] : memref<16x16xf32, #tpu.memory_space<vmem>>, vector<16x16xf32>
      tpu.vector_store %arg10[%c0_13, %c0_14], %14 {strides = array<i32>} : memref<16x16xf32, #tpu.memory_space<vmem>>, vector<16x16xf32>,
    } else {
    }
    return
  }
  func.func @transform_0(%arg0: i32, %arg1: i32) -> (i32, i32, i32) {
    %c0_i32 = arith.constant 0 : i32
    %c0_i32_0 = arith.constant 0 : i32
    return %arg1, %c0_i32, %arg0 : i32, i32, i32
  }
  func.func @transform_1(%arg0: i32, %arg1: i32) -> (i32, i32) {
    %c0_i32 = arith.constant 0 : i32
    %c0_i32_0 = arith.constant 0 : i32
    return %c0_i32, %arg0 : i32, i32
  }
  func.func @transform_2(%arg0: i32, %arg1: i32) -> (i32, i32) {
    %c0_i32 = arith.constant 0 : i32
    %c0_i32_0 = arith.constant 0 : i32
    return %c0_i32, %arg0 : i32, i32
  }
  func.func @transform_3(%arg0: i32, %arg1: i32) -> (i32, i32) {
    %c0_i32 = arith.constant 0 : i32
    %c0_i32_0 = arith.constant 0 : i32
    return %c0_i32, %arg0 : i32, i32
  }
  func.func @transform_4(%arg0: i32, %arg1: i32) -> (i32, i32) {
    %c0_i32 = arith.constant 0 : i32
    %c0_i32_0 = arith.constant 0 : i32
    %c0_i32_1 = arith.constant 0 : i32
    return %c0_i32, %c0_i32_0 : i32, i32
  }
  func.func @transform_5(%arg0: i32, %arg1: i32) -> (i32, i32) {
    %c0_i32 = arith.constant 0 : i32
    %c0_i32_0 = arith.constant 0 : i32
    %c0_i32_1 = arith.constant 0 : i32
    return %c0_i32, %c0_i32_0 : i32, i32
  }
  func.func @transform_6(%arg0: i32, %arg1: i32) -> (i32, i32, i32) {
    %c0_i32 = arith.constant 0 : i32
    %c0_i32_0 = arith.constant 0 : i32
    %c0_i32_1 = arith.constant 0 : i32
    %c0_i32_2 = arith.constant 0 : i32
    return %c0_i32, %c0_i32_0, %c0_i32_1 : i32, i32, i32
  }
  func.func @transform_7(%arg0: i32, %arg1: i32) -> (i32, i32, i32) {
    %c0_i32 = arith.constant 0 : i32
    %c0_i32_0 = arith.constant 0 : i32
    return %arg1, %c0_i32, %arg0 : i32, i32, i32
  }
  func.func @transform_8(%arg0: i32, %arg1: i32) -> (i32, i32) {
    %c0_i32 = arith.constant 0 : i32
    %c0_i32_0 = arith.constant 0 : i32
    return %c0_i32, %arg0 : i32, i32
  }
}

</mosaic_0001>

<bundles_post_ra>
// kernel: perfboost_rollout.1
= control target key start
LH: loop header
LB: loop body
LE: loop exit
PB: predicated region body
PF: predicated region fallthrough
CT: control target
= control target key end

     0   :  { %s1064_s27 = smov 0   ;;  %s1066_s28 = smov 0   ;;  %s1224_s0 = inlined_call_operand.vmem [shape: f32[24,8,16], index: 0, kind: input, shape index: {}]   ;;  %s1225_s1 = inlined_call_operand.vmem [shape: f32[8,16], index: 1, kind: input, shape index: {}]   ;;  %s1226_s2 = inlined_call_operand.vmem [shape: f32[8,16], index: 2, kind: input, shape index: {}]   ;;  %s1227_s3 = inlined_call_operand.vmem [shape: f32[16,16], index: 3, kind: input, shape index: {}]   ;;  %s1228_s4 = inlined_call_operand.vmem [shape: f32[8,40], index: 4, kind: input, shape index: {}]   ;;  %s1229_s5 = inlined_call_operand.vmem [shape: f32[24,48], index: 5, kind: input, shape index: {}]   ;;  %s1230_s6 = inlined_call_operand.vmem [shape: f32[8,8,16], index: 6, kind: input, shape index: {}]   ;;  %s1231_s7 = inlined_call_operand.vmem [shape: f32[24,8,16], index: 7, kind: output, shape index: {0}]   ;;  %s1232_s8 = inlined_call_operand.vmem [shape: f32[16,16], index: 8, kind: output, shape index: {1}]  }
   0x1   :  { %s1068_s29 = smov 0  }
   0x2 LB: > { %s28_s30 = sadd.s32 1, %s1006_s28  ;;  %p849_p0 = scmp.ge.s32.totalorder %s1010_s29, 1  ;;  %s1010_s29 = sphi %s1068_s29, %s19_s29   ;;  %s1006_s28 = sphi %s1066_s28, %s1234_s28   ;;  %s1002_s27 = sphi %s1064_s27, %s1233_s27  }
   0x3   : > { %p29_p1 = scmp.ge.s32.totalorder %s28_s30, 3  ;;  %p312_p2 = scmp.lt.s32.totalorder %s1010_s29, 4 }
   0x5   : > { %s1236_s30 = smov (%p29_p1, %s28_s30), 0  ;;  %p313_p3 = pnand %p849_p0, %p312_p2 }
   0x6   : > { %s850_s9 = sshll.u32 (!%p313_p3), %s1002_s27, 3  ;;  %p854_p5 = scmp.ne.s32.totalorder (!%p313_p3), %s1002_s27, 0 }
   0x7   : > { %316 = sbr.rel (%p313_p3) target bundleno = 639 (0x27f), region = 48  ;;  %p369_p4 = scmp.lt.s32.totalorder (!%p313_p3), %s850_s9, 23 }
   0xe   : > { %s370_s10 = scalar_select %p369_p4, %s850_s9, 23 }
   0xf   : > { %405 = sbr.rel (%p854_p5) target bundleno = 22 (0x16), region = 52  ;;  %v406_v0 = vld [vmem:[%s1227_s3] sm:$0xff] (!%p854_p5)  ;;  %vm408_vm0 = vcmask (!%p854_p5), 130048   ;;  %v407_v1 = vld [vmem:[%s1227_s3 + $0x8] sm:$0xff] (!%p854_p5) }
  0x10   : > { %s851_s11 = sshll.u32 %s370_s10, 3  ;;  %v411_v2 = vld [vmem:[%s1225_s1] sm:$0xff] (!%p854_p5)  ;;  %409 = vst.msk [vmem:[#allocation2] sm:$0xff] (!%p854_p5), %vm408_vm0, %v406_v0  ;;  %410 = vst.msk [vmem:[#allocation2 + $0x8] sm:$0xff] (!%p854_p5), %vm408_vm0, %v407_v1 }
  0x11   : > { %s1088_s14 = scalar_lea.vmem %s1224_s0, %s851_s11  ;;  %s1093_s17 = scalar_lea.vmem %s1231_s7, %s851_s11  ;;  %412 = vst.msk [vmem:[#allocation2 + $0x18] sm:$0xff] (!%p854_p5), %vm408_vm0, %v411_v2  ;;  %v413_v3 = vld [vmem:[%s1226_s2] sm:$0xff] (!%p854_p5) }
  0x12   : > { %414 = vst.msk [vmem:[#allocation2 + $0x20] sm:$0xff] (!%p854_p5), %vm408_vm0, %v413_v3 }
  0x16 PF: > { %v1111_v4 = vld [vmem:[%s1228_s4] sm:$0xff]  ;;  %v1121_v6 = vld [vmem:[%s1229_s5 + $0x8] sm:$0xff]  ;;  %s427_s16 = ssub.s32 20, %s850_s9  ;;  %v1126_v7 = vld [vmem:[%s1229_s5 + $0x10] sm:$0xff] }
  0x17   : > { %v1116_v5 = vld [vmem:[%s1229_s5] sm:$0xff]  ;;  %v1136_v9 = vld [vmem:[%s1230_s6 + $0x8] sm:$0xff]  ;;  %p428_p6 = scmp.lt.s32.totalorder %s427_s16, 8  ;;  %v1141_v10 = vld [vmem:[%s1230_s6 + $0x10] sm:$0xff]  ;;  %p866_p7 = scmp.le.s32.totalorder %s427_s16, 0 }
  0x18   : > { %v1131_v8 = vld [vmem:[%s1230_s6] sm:$0xff]  ;;  %v1146_v11 = vld [vmem:[%s1230_s6 + $0x18] sm:$0xff]  ;;  %v1156_v13 = vld [vmem:[%s1230_s6 + $0x28] sm:$0xff]  ;;  %s1165_s20 = smov (!%p866_p7), 0  }
  0x19   : > { %v1151_v12 = vld [vmem:[%s1230_s6 + $0x20] sm:$0xff]  ;;  %v1161_v14 = vld [vmem:[%s1230_s6 + $0x30] sm:$0xff]  ;;  %s1163_s19 = scalar_select %p428_p6, %s427_s16, 8 }
  0x1a   : > { %777 = sbr.rel (%p866_p7) target bundleno = 630 (0x276), region = 110 }
  0x21 LB: >> { %v441_v15 = vld [vmem:[#allocation2] sm:$0xff]  ;;  %v442_v16 = vld [vmem:[#allocation2 + $0x8] sm:$0xff]  ;;  %v1016_v17 = vmov 0.0|0.0   ;;  %s857_s21 = sshll.u32 %s1014_s20, 3  ;;  %vm439_vm1 = vcmask 130048   ;;  %vm1017_vm2 = vmmov 0   ;;  %v521_v26 = vlaneseq  ;;  %s1014_s20 = sphi %s1165_s20, %s433_s20  }
  0x22   : >> { %918 = vmatprep.subr.bf16.mxu0 %v1016_v17  ;;  %v919_v18 = vpack.c.bf16 %v442_v16, %v441_v15  ;;  %924 = vmatprep.subr.bf16.mxu1 %v1016_v17  ;;  %v1018_v19 = vmov 0.0   ;;  %s437_s16 = scalar_lea.vmem %s1088_s14, %s857_s21  ;;  %v444_v21 = vld [vmem:[#allocation2 + $0x18] sm:$0xff]  ;;  %v445_v24 = vld [vmem:[#allocation2 + $0x20] sm:$0xff]  ;;  %vm446_vm3 = vcmask 326656   ;;  %vm577_vm4 = vcmask 392192   ;;  %s667_s22 = scalar_lea.vmem %s1093_s17, %s857_s21 }
  0x23   : >> { %894 = vmatprep.mubr.msk.f32.mxu0 %vm1017_vm2, %v1018_v19  ;;  %909 = vmatprep.mubr.msk.f32.mxu1 %vm1017_vm2, %v1018_v19  ;;  %v438_v20 = vld [vmem:[%s437_s16] sm:$0xff]  ;;  %v522_v28 = vshrl.u32 %v521_v26, 7  ;;  %s433_s20 = sadd.s32 1, %s1014_s20  }
  0x24   : >> { %920 = vmatpush3.bf16.msra.mxu0 %v919_v18  ;;  %926 = vmatpush3.bf16.msra.mxu1 %v919_v18  ;;  %440 = vst.msk [vmem:[#allocation2 + $0x10] sm:$0xff] %vm439_vm1, %v438_v20  ;;  %671 = vst.msk [vmem:[#allocation2 + $0x18] sm:$0xff] %vm439_vm1, %v438_v20  ;;  %p432_p8 = scmp.ge.s32.totalorder %s433_s20, %s1163_s19 }
  0x25   : >> { %921 = vmatprep.subr.bf16.mxu0 %v1016_v17  ;;  %927 = vmatprep.subr.bf16.mxu1 %v1016_v17  ;;  %v523_v29 = vsub.s32 0, %v522_v28  ;;  %v530_v34 = vsub.s32 1, %v522_v28  ;;  %v537_v39 = vsub.s32 2, %v522_v28  ;;  %v544_v44 = vsub.s32 3, %v522_v28 }
  0x26   : >> { %v551_v49 = vsub.s32 4, %v522_v28  ;;  %v558_v54 = vsub.s32 5, %v522_v28  ;;  %v565_v59 = vsub.s32 6, %v522_v28 }
  0x2b   : >> { %v443_v22 = vld [vmem:[#allocation2 + $0x10] sm:$0xff] }
  0x2c   : >> { %v922_v23 = vpack.c.bf16 %v444_v21, %v443_v22 }
  0x2e   : >> { %923 = vmatpush3.bf16.msra.mxu0 %v922_v23  ;;  %929 = vmatpush3.bf16.msra.mxu1 %v922_v23 }
  0x2f   : >> { %892 = vmatprep.subr.mxu0 %v1018_v19  ;;  %930 = vmatprep.subr.bf16.mxu1 %v1016_v17 }
  0x32   : >> { %893 = vmatpush3.msra.mxu0 %v445_v24 }
  0x33   : >> { %895 = vmatmul.mubr.msk.f32.vlgmr.msra.gmra.mrb[0].mxu0 %vm446_vm3, %v1111_v4 }
 0x106   : >> { %v516_v25 = vpop.f32.mrb[0].mxu0 }
 0x107   : >> { %968 = vtanh.f32 %v516_v25  ;;  %v896_v27 = vpop.f32.mrb[1].mxu0 }
 0x111   : >> { %v969_v30 = vpop.eup %968 }
 0x112   : >> { %v524_v31 = vrot.slane %v969_v30, %v523_v29 }
 0x114   : >> { %v525_v32 = vmul.f32 %v524_v31, %v1131_v8 }
 0x116   : >> { %v526_v33 = vadd.f32 %v525_v32, %v516_v25 }
 0x118   : >> { %970 = vtanh.f32 %v526_v33 }
 0x122   : >> { %v971_v35 = vpop.eup %970 }
 0x123   : >> { %v531_v36 = vrot.slane %v971_v35, %v530_v34 }
 0x125   : >> { %v532_v37 = vmul.f32 %v531_v36, %v1136_v9 }
 0x127   : >> { %v533_v38 = vadd.f32 %v532_v37, %v526_v33 }
 0x129   : >> { %972 = vtanh.f32 %v533_v38 }
 0x133   : >> { %v973_v40 = vpop.eup %972 }
 0x134   : >> { %v538_v41 = vrot.slane %v973_v40, %v537_v39 }
 0x136   : >> { %v539_v42 = vmul.f32 %v538_v41, %v1141_v10 }
 0x138   : >> { %v540_v43 = vadd.f32 %v539_v42, %v533_v38 }
 0x13a   : >> { %974 = vtanh.f32 %v540_v43 }
 0x144   : >> { %v975_v45 = vpop.eup %974 }
 0x145   : >> { %v545_v46 = vrot.slane %v975_v45, %v544_v44 }
 0x147   : >> { %v546_v47 = vmul.f32 %v545_v46, %v1146_v11 }
 0x149   : >> { %v547_v48 = vadd.f32 %v546_v47, %v540_v43 }
 0x14b   : >> { %976 = vtanh.f32 %v547_v48 }
 0x155   : >> { %v977_v50 = vpop.eup %976 }
 0x156   : >> { %v552_v51 = vrot.slane %v977_v50, %v551_v49 }
 0x158   : >> { %v553_v52 = vmul.f32 %v552_v51, %v1151_v12 }
 0x15a   : >> { %v554_v53 = vadd.f32 %v553_v52, %v547_v48 }
 0x15c   : >> { %978 = vtanh.f32 %v554_v53 }
 0x166   : >> { %v979_v55 = vpop.eup %978 }
 0x167   : >> { %v559_v56 = vrot.slane %v979_v55, %v558_v54 }
 0x169   : >> { %v560_v57 = vmul.f32 %v559_v56, %v1156_v13 }
 0x16b   : >> { %v561_v58 = vadd.f32 %v560_v57, %v554_v53 }
 0x16d   : >> { %980 = vtanh.f32 %v561_v58 }
 0x177   : >> { %v981_v60 = vpop.eup %980 }
 0x178   : >> { %v566_v61 = vrot.slane %v981_v60, %v565_v59 }
 0x17a   : >> { %v567_v62 = vmul.f32 %v566_v61, %v1161_v14 }
 0x17c   : >> { %v568_v63 = vadd.f32 %v567_v62, %v561_v58 }
 0x17e   : >> { %982 = vtanh.f32 %v568_v63 }
 0x188   : >> { %v983_v0 = vpop.eup %982 }
 0x189   : >> { %570 = vst.msk [vmem:[#allocation2 + $0x28] sm:$0xff] %vm439_vm1, %v983_v0 }
 0x190   : >> { %v576_v1 = vld [vmem:[#allocation2 + $0x28] sm:$0xff] }
 0x191   : >> { %v931_v2 = vpack.c.bf16 %v576_v1, %v445_v24 }
 0x193   : >> { %932 = vmatpush3.bf16.msra.mxu1 %v931_v2 }
 0x196   : >> { %910 = vmatmul.mubr.msk.f32.vlgmr.msra.gmra.mrb[0].mxu1 %vm577_vm4, %v1116_v5 }
 0x197   : >> { %912 = vmatprep.mubr.msk.f32.mxu1 %vm1017_vm2, %v1018_v19 }
 0x19a   : >> { %913 = vmatmul.mubr.msk.f32.gmra.mrb[2].mxu1 %vm577_vm4, %v1121_v6 }
 0x19b   : >> { %915 = vmatprep.mubr.msk.f32.mxu1 %vm1017_vm2, %v1018_v19 }
 0x19e   : >> { %916 = vmatmul.mubr.msk.f32.gmra.mrb[4].mxu1 %vm577_vm4, %v1126_v7 }
 0x269   : >> { %v653_v3 = vpop.f32.mrb[0].mxu1 }
 0x26a   : >> { %669 = vst.msk [vmem:[#allocation2] sm:$0xff] %vm439_vm1, %v653_v3  ;;  %v911_v15 = vpop.f32.mrb[1].mxu1 }
 0x26d   : >> { %v658_v16 = vpop.f32.mrb[2].mxu1 }
 0x26e   : >> { %670 = vst.msk [vmem:[#allocation2 + $0x8] sm:$0xff] %vm439_vm1, %v658_v16  ;;  %v914_v17 = vpop.f32.mrb[3].mxu1 }
 0x26f   : > { %435 = sbr.rel (!%p432_p8) target bundleno = 33 (0x21), region = 116 }
 0x271   : >> { %v663_v18 = vpop.f32.mrb[4].mxu1 }
 0x272   : >> { %668 = vst.msk [vmem:[%s667_s22] sm:$0xff] %vm439_vm1, %v663_v18  ;;  %672 = vst.msk [vmem:[#allocation2 + $0x20] sm:$0xff] %vm439_vm1, %v663_v18  ;;  %v917_v20 = vpop.f32.mrb[5].mxu1 }
 0x276 PF: > { %p862_p9 = scmp.ne.s32.totalorder %s1002_s27, 2 }
 0x277   : > { %v677_v19 = vld [vmem:[#allocation2] sm:$0xff] (!%p862_p9)  ;;  %vm679_vm5 = vcmask (!%p862_p9), 130048   ;;  %v678_v21 = vld [vmem:[#allocation2 + $0x8] sm:$0xff] (!%p862_p9) }
 0x278   : > { %676 = sbr.rel (%p862_p9) target bundleno = 639 (0x27f), region = 63  ;;  %680 = vst.msk [vmem:[%s1232_s8] sm:$0xff] (!%p862_p9), %vm679_vm5, %v677_v19  ;;  %681 = vst.msk [vmem:[%s1232_s8 + $0x8] sm:$0xff] (!%p862_p9), %vm679_vm5, %v678_v21 }
 0x27f PF: > { %s19_s29 = sadd.s32 1, %s1010_s29   ;;  %s1233_s27 = smov %s1006_s28 }
 0x280   : > { %p16_p10 = scmp.ge.s32.totalorder %s19_s29, 5   ;;  %s1234_s28 = smov %s1236_s30 }
 0x282   :  { %18 = sbr.rel (!%p16_p10) target bundleno = 2 (0x2), region = 127 }

</bundles_post_ra>
